<compile_context>
chip_gen: v7x
topology: tpu7x:2x2x1
jax: 0.10.0
libtpu: 0.0.40
codegen_flags: <defaults>
</compile_context>

<pallas_src>
import numpy as np
import jax
import jax.numpy as jnp
from jax import lax
from jax.experimental import pallas as pl
from jax.experimental.pallas import tpu as pltpu

# ----------------------------- model hyper-params -----------------------------
VOCAB = 50
VOCAB_PAD = 128                # one-hot width / embedding rows, lane-dense
EMBED_DIM = 32                 # embedding_dim
N_LABELS = 16                  # n_labels
N_PAD = 128                    # n_labels padded to a full lane tile
WINDOW_SIZES = [3, 4, 5]       # window_sizes
N_FILTERS = [32, 32, 32]       # n_filters (small synthetic sizes)
EMB_SCALING = 20.0             # embedding_scaling
F_TOTAL = int(np.sum(N_FILTERS))
F_PAD = 128                    # total filters padded to a full lane tile
W_MAX = max(WINDOW_SIZES)

# PyTorch Conv1d(padding='same'): total_pad = k-1, left = (k-1)//2, right = rest.
_LEFT_PAD = [(k - 1) // 2 for k in WINDOW_SIZES]                       # [1, 1, 2]
_RIGHT_PAD = [(k - 1) - lp for k, lp in zip(WINDOW_SIZES, _LEFT_PAD)]  # [1, 2, 2]
_GLOBAL_LEFT = max(_LEFT_PAD)                                          # = 2
_GLOBAL_RIGHT = 8 - _GLOBAL_LEFT      # pad to L_pad = L + 8 (8-aligned sublanes)
# start offset of window tap w for conv i inside the globally padded sequence:
_OFFSETS = [_GLOBAL_LEFT - lp for lp in _LEFT_PAD]                     # [1, 1, 0]

TARGET_ROWS = 2048             # target MXU rows (Bt * L) per grid step


# --------------------------------- kernel -------------------------------------
def _make_kernel(Bt, L, L_pad):
    """Embed + fused-conv + output-layer + masked max-pool for Bt documents."""
    D = EMBED_DIM

    def kernel(vl_ref,                       # SMEM (1,) int32 : valid sequence length
               ids_ref,                      # (Bt, L_pad, 1)  int32 padded token ids
               emb_ref,                      # (VOCAB_PAD, D)  bf16 embedding table
               wf_ref,                       # (W_MAX, D, F_PAD) bf16 fused conv weight
               bf_ref,                       # (1, F_PAD)      f32  fused conv bias
               wo_ref,                       # (F_PAD, N_PAD)  bf16 output-layer weight
               bo_ref,                       # (1, N_PAD)      f32  output-layer bias
               o_ref):                       # (Bt, N_PAD)     f32  max-pooled logits
        # ---- embedding lookup in-kernel: one-hot (MXU) x embedding table ----
        ids = ids_ref[...]                                        # (Bt, L_pad, 1)
        vocab_iota = lax.broadcasted_iota(jnp.int32, (Bt, L_pad, VOCAB_PAD), 2)
        onehot = jnp.where(vocab_iota == ids, 1.0, 0.0).astype(jnp.bfloat16)
        xb = jnp.dot(onehot.reshape(Bt * L_pad, VOCAB_PAD), emb_ref[...],
                     preferred_element_type=jnp.float32)          # exact bf16 emb rows
        xb = xb.reshape(Bt, L_pad, D)                             # f32; pad rows == 0

        # ---- fused 3-branch 'same' conv: W_MAX accumulating (Bt*L,D)x(D,F_PAD) ----
        acc = jnp.zeros((Bt * L, F_PAD), jnp.float32)
        for u in range(W_MAX):                                    # static unroll
            xs = xb[:, u:u + L, :].reshape(Bt * L, D).astype(jnp.bfloat16)
            acc = acc + jnp.dot(xs, wf_ref[u],
                                preferred_element_type=jnp.float32)
        h = jnp.maximum(acc + bf_ref[...], 0.0)                   # bias + ReLU, f32
        # TODO(synk): dropout(p=0.3) is the deterministic eval-mode identity here.

        # ---- per-position output layer + adaptive_max_pool1d(.., 1) ----
        logits = jnp.dot(h.astype(jnp.bfloat16), wo_ref[...],
                         preferred_element_type=jnp.float32) + bo_ref[...]
        logits = logits.reshape(Bt, L, N_PAD)
        pos = lax.broadcasted_iota(jnp.int32, (Bt, L, N_PAD), 1)
        logits = jnp.where(pos < vl_ref[0], logits, -jnp.inf)     # only valid positions
        o_ref[...] = jnp.max(logits, axis=1)                      # (Bt, N_PAD)

    return kernel


# ------------------------------ host-side helpers ------------------------------
def _fuse_conv_params(conv_ws, conv_bs):
    """Pack 3 branch weights (W_i, D, F_i) into one zero-padded (W_MAX, D, F_PAD)."""
    wf = np.zeros((W_MAX, EMBED_DIM, F_PAD), np.float32)
    bf = np.zeros((1, F_PAD), np.float32)
    col = 0
    for wk, bk, off in zip(conv_ws, conv_bs, _OFFSETS):
        W, _, Fi = wk.shape
        wf[off:off + W, :, col:col + Fi] = np.asarray(wk)
        bf[0, col:col + Fi] = np.asarray(bk).reshape(-1)
        col += Fi
    return jnp.asarray(wf), jnp.asarray(bf)


def _choose_batch_tile(B, L):
    """Bt so that Bt*L ~= TARGET_ROWS MXU rows; never force extra serial steps."""
    bt = max(1, TARGET_ROWS // L)
    if bt >= B:
        return B, 1                       # one step: best for 1-TC chips at small B
    # multi-step: keep the output block sublane-aligned (Bt multiple of 8).
    # TODO(synk): for very long documents (L >> TARGET_ROWS) this floor of 8 grows
    #             the per-step VMEM footprint; not relevant at these sizes.
    bt = max(8, (bt // 8) * 8)
    steps = -(-B // bt)
    return bt, steps


def cnn_pallas_forward(docs, params):
    """Replicates CNN.forward (att_module='baseline') for integer docs (B, L0)."""
    emb_mat, conv_ws, conv_bs, wo_t, bo = params

    # ---- dynamic truncation (mirrors the torch max_words logic); one host sync ----
    docs_np = np.asarray(docs)
    B, L0 = docs_np.shape
    nz = docs_np != 0
    max_words = max(int(nz.sum(-1).max()), W_MAX)
    valid_len = min(max_words, L0)        # positions that exist after torch truncation
    # coarse power-of-two bucketing of the compiled length limits recompiles;
    # exact torch semantics are preserved by zeroing ids >= valid_len and by the
    # scalar-prefetched max-pool bound inside the kernel.
    L = max(8, 1 << (max_words - 1).bit_length())
    L_pad = L + _GLOBAL_LEFT + _GLOBAL_RIGHT          # = L + 8, sublane aligned

    Bt, steps = _choose_batch_tile(B, L)
    B_pad = Bt * steps

    # ---- token ids with 'same' padding + truncation baked in (tiny int32) ----
    ids_np = np.zeros((B_pad, L_pad, 1), np.int32)
    ids_np[:B, _GLOBAL_LEFT:_GLOBAL_LEFT + valid_len, 0] = docs_np[:, :valid_len]
    ids = jnp.asarray(ids_np)

    # ---- parameters: fused / lane-padded, matmul operands in bf16 ----
    emb_pad = np.zeros((VOCAB_PAD, EMBED_DIM), np.float32)
    emb_pad[:VOCAB] = np.asarray(emb_mat)
    emb_bf = jnp.asarray(emb_pad).astype(jnp.bfloat16)

    wf, bf = _fuse_conv_params(conv_ws, conv_bs)
    wf_bf = wf.astype(jnp.bfloat16)

    wo_pad = np.zeros((F_PAD, N_PAD), np.float32)
    wo_pad[:F_TOTAL, :N_LABELS] = np.asarray(wo_t)
    wo_bf = jnp.asarray(wo_pad).astype(jnp.bfloat16)
    bo_pad = np.zeros((1, N_PAD), np.float32)
    bo_pad[:, :N_LABELS] = np.asarray(bo)
    bo_p = jnp.asarray(bo_pad)

    kernel = _make_kernel(Bt, L, L_pad)
    vl = jnp.array([valid_len], jnp.int32)

    out = pl.pallas_call(
        kernel,
        out_shape=jax.ShapeDtypeStruct((B_pad, N_PAD), jnp.float32),
        grid_spec=pltpu.PrefetchScalarGridSpec(
            num_scalar_prefetch=1,
            grid=(steps,),
            in_specs=[
                pl.BlockSpec((Bt, L_pad, 1), lambda b, vl: (b, 0, 0)),
                pl.BlockSpec((VOCAB_PAD, EMBED_DIM), lambda b, vl: (0, 0)),
                pl.BlockSpec((W_MAX, EMBED_DIM, F_PAD), lambda b, vl: (0, 0, 0)),
                pl.BlockSpec((1, F_PAD), lambda b, vl: (0, 0)),
                pl.BlockSpec((F_PAD, N_PAD), lambda b, vl: (0, 0)),
                pl.BlockSpec((1, N_PAD), lambda b, vl: (0, 0)),
            ],
            out_specs=pl.BlockSpec((Bt, N_PAD), lambda b, vl: (b, 0)),
        ),
        compiler_params=pltpu.CompilerParams(
            dimension_semantics=("parallel",)),
    )(vl, ids, emb_bf, wf_bf, bf, wo_bf, bo_p)
    return out[:B, :N_LABELS]                                     # (B, n_labels)


# ------------------------------ reference (JAX) --------------------------------
def cnn_reference_forward(docs, params):
    """Independent per-branch formulation (same bf16 operands, f32 accumulation)."""
    emb_mat, conv_ws, conv_bs, wo_t, bo = params
    docs_np = np.asarray(docs)
    nz = docs_np != 0
    max_words = max(int(nz.sum(-1).max()), W_MAX)
    docs_r = jnp.asarray(docs_np[:, :max_words])
    mask_r = jnp.asarray(nz[:, :max_words], jnp.float32)[..., None]
    we = (emb_mat[docs_r] * mask_r).astype(jnp.bfloat16)
    x = jnp.pad(we, ((0, 0), (_GLOBAL_LEFT, max(_RIGHT_PAD)), (0, 0)))
    L = docs_r.shape[1]
    feats = []
    for wk, bk, off in zip(conv_ws, conv_bs, _OFFSETS):
        wkb = wk.astype(jnp.bfloat16)
        W = wk.shape[0]
        acc = sum(jnp.einsum('bld,df->blf', x[:, off + w: off + w + L, :], wkb[w],
                             preferred_element_type=jnp.float32)
                  for w in range(W))
        feats.append(jnp.maximum(acc + bk[None], 0.0))
    H = jnp.concatenate(feats, axis=-1)
    logits = jnp.einsum('blf,fn->bln', H.astype(jnp.bfloat16),
                        wo_t.astype(jnp.bfloat16),
                        preferred_element_type=jnp.float32) + bo[None]
    return jnp.max(logits, axis=1)


# --------------------------------- params --------------------------------------
def init_params(key):
    ks = jax.random.split(key, 2 + 2 * len(WINDOW_SIZES))
    # token embedding matrix, normalised exactly like CNN.__init__
    emb = jax.random.normal(ks[0], (VOCAB, EMBED_DIM), jnp.float32)
    emb = emb - emb.mean()
    emb = emb / (emb.std() * EMB_SCALING)
    emb = emb.at[0].set(0.0)                                   # padding_idx=0

    conv_ws, conv_bs = [], []
    for i, (W, Fi) in enumerate(zip(WINDOW_SIZES, N_FILTERS)):
        fan_in, fan_out = EMBED_DIM * W, Fi * W
        bound = float(np.sqrt(6.0 / (fan_in + fan_out)))       # xavier_uniform
        w_pt = jax.random.uniform(ks[1 + i], (Fi, EMBED_DIM, W),
                                  jnp.float32, -bound, bound)  # torch (F, D, W)
        conv_ws.append(jnp.transpose(w_pt, (2, 1, 0)))          # -> (W, D, F)
        conv_bs.append(jnp.full((1, Fi), 0.01, jnp.float32))

    bound = float(np.sqrt(6.0 / (F_TOTAL + N_LABELS)))
    w_out = jax.random.uniform(ks[-1], (N_LABELS, F_TOTAL),
                               jnp.float32, -bound, bound)      # torch (n_labels, F)
    wo_t = w_out.T                                              # (F_total, n_labels)
    bo = jnp.full((1, N_LABELS), 0.01, jnp.float32)
    return emb, conv_ws, conv_bs, wo_t, bo


# ----------------------------------- main ---------------------------------------
if __name__ == "__main__":
    key = jax.random.PRNGKey(0)
    pkey, dkey = jax.random.split(key)
    params = init_params(pkey)

    B, L0 = 2, 16
    docs = jax.random.randint(dkey, (B, L0), 1, VOCAB, dtype=jnp.int32)
    docs = docs.at[0, 12:].set(0)        # trailing padding tokens
    docs = docs.at[1, 10:].set(0)

    logits = cnn_pallas_forward(docs, params)
    logits = jax.block_until_ready(logits)

    ref = jax.block_until_ready(cnn_reference_forward(docs, params))
    assert logits.shape == (B, N_LABELS)
    assert bool(jnp.all(jnp.isfinite(logits)))
    # bf16 matmul operands (f32 accumulation) in both paths -> modest tolerance
    np.testing.assert_allclose(np.asarray(logits), np.asarray(ref),
                               rtol=2e-3, atol=2e-3)
    print("KERNEL_OK")
</pallas_src>

<mosaic_0001>
module attributes {stable_mosaic.version = 11 : i64} {
  func.func @kernel(%arg0: i32, %arg1: memref<1xi32, #tpu.memory_space<smem>>, %arg2: memref<2x24x1xi32, #tpu.memory_space<vmem>>, %arg3: memref<128x32xbf16, #tpu.memory_space<vmem>>, %arg4: memref<5x32x128xbf16, #tpu.memory_space<vmem>>, %arg5: memref<1x128xf32, #tpu.memory_space<vmem>>, %arg6: memref<128x128xbf16, #tpu.memory_space<vmem>>, %arg7: memref<1x128xf32, #tpu.memory_space<vmem>>, %arg8: memref<2x128xf32, #tpu.memory_space<vmem>>) attributes {dimension_semantics = [#tpu.dimension_semantics<parallel>], iteration_bounds = array<i64: 1>, scalar_prefetch = 1 : i64, scratch_operands = 0 : i64, tpu.core_type = #tpu.core_type<tc>, window_params = [{transform_indices = @transform_0, window_bounds = array<i64: 2, 24, 1>}, {pipeline_mode = #tpu.pipeline_mode<synchronous>, transform_indices = @transform_1, window_bounds = array<i64: 128, 32>}, {pipeline_mode = #tpu.pipeline_mode<synchronous>, transform_indices = @transform_2, window_bounds = array<i64: 5, 32, 128>}, {pipeline_mode = #tpu.pipeline_mode<synchronous>, transform_indices = @transform_3, window_bounds = array<i64: 1, 128>}, {pipeline_mode = #tpu.pipeline_mode<synchronous>, transform_indices = @transform_4, window_bounds = array<i64: 128, 128>}, {pipeline_mode = #tpu.pipeline_mode<synchronous>, transform_indices = @transform_5, window_bounds = array<i64: 1, 128>}, {transform_indices = @transform_6, window_bounds = array<i64: 2, 128>}]} {
    %c0 = arith.constant 0 : index
    %c0_0 = arith.constant 0 : index
    %c0_1 = arith.constant 0 : index
    %0 = vector.load %arg2[%c0, %c0_0, %c0_1] : memref<2x24x1xi32, #tpu.memory_space<vmem>>, vector<2x24x1xi32>
    %1 = tpu.iota {dimensions = array<i32: 2>} : vector<2x24x128xi32>
    %2 = vector.broadcast %0 : vector<2x24x1xi32> to vector<2x24x128xi32>
    %3 = arith.cmpi eq, %1, %2 : vector<2x24x128xi32>
    %cst = arith.constant 1.000000e+00 : f32
    %cst_2 = arith.constant 0.000000e+00 : f32
    %4 = vector.broadcast %cst : f32 to vector<2x24x128xf32>
    %5 = vector.broadcast %cst_2 : f32 to vector<2x24x128xf32>
    %6 = arith.select %3, %4, %5 : vector<2x24x128xi1>, vector<2x24x128xf32>
    %7 = arith.truncf %6 : vector<2x24x128xf32> to vector<2x24x128xbf16>
    %8 = vector.shape_cast %7 : vector<2x24x128xbf16> to vector<48x128xbf16>
    %c0_3 = arith.constant 0 : index
    %c0_4 = arith.constant 0 : index
    %9 = vector.load %arg3[%c0_3, %c0_4] : memref<128x32xbf16, #tpu.memory_space<vmem>>, vector<128x32xbf16>
    %cst_5 = arith.constant dense<0.000000e+00> : vector<48x32xf32>
    %10 = tpu.matmul %8, %9, %cst_5 {dimension_numbers = #tpu.dot_dimension_numbers<[1], [0], [0], [1], [0, 0, 1, 1], [], []>} : vector<48x128xbf16>, vector<128x32xbf16>, vector<48x32xf32> -> vector<48x32xf32>
    %11 = vector.shape_cast %10 : vector<48x32xf32> to vector<2x24x32xf32>
    %cst_6 = arith.constant 0.000000e+00 : f32
    %12 = vector.broadcast %cst_6 : f32 to vector<32x128xf32>
    %13 = vector.extract_strided_slice %11 {offsets = [0, 0, 0], sizes = [2, 16, 32], strides = [1, 1, 1]} : vector<2x24x32xf32> to vector<2x16x32xf32>
    %14 = vector.shape_cast %13 : vector<2x16x32xf32> to vector<32x32xf32>
    %15 = arith.truncf %14 : vector<32x32xf32> to vector<32x32xbf16>
    %c0_7 = arith.constant 0 : index
    %c0_8 = arith.constant 0 : index
    %c0_9 = arith.constant 0 : index
    %16 = vector.load %arg4[%c0_7, %c0_8, %c0_9] : memref<5x32x128xbf16, #tpu.memory_space<vmem>>, vector<1x32x128xbf16>
    %17 = vector.shape_cast %16 : vector<1x32x128xbf16> to vector<32x128xbf16>
    %cst_10 = arith.constant dense<0.000000e+00> : vector<32x128xf32>
    %18 = tpu.matmul %15, %17, %cst_10 {dimension_numbers = #tpu.dot_dimension_numbers<[1], [0], [0], [1], [0, 0, 1, 1], [], []>} : vector<32x32xbf16>, vector<32x128xbf16>, vector<32x128xf32> -> vector<32x128xf32>
    %19 = arith.addf %12, %18 : vector<32x128xf32>
    %20 = vector.extract_strided_slice %11 {offsets = [0, 1, 0], sizes = [2, 16, 32], strides = [1, 1, 1]} : vector<2x24x32xf32> to vector<2x16x32xf32>
    %21 = vector.shape_cast %20 : vector<2x16x32xf32> to vector<32x32xf32>
    %22 = arith.truncf %21 : vector<32x32xf32> to vector<32x32xbf16>
    %c1 = arith.constant 1 : index
    %c0_11 = arith.constant 0 : index
    %c0_12 = arith.constant 0 : index
    %23 = vector.load %arg4[%c1, %c0_11, %c0_12] : memref<5x32x128xbf16, #tpu.memory_space<vmem>>, vector<1x32x128xbf16>
    %24 = vector.shape_cast %23 : vector<1x32x128xbf16> to vector<32x128xbf16>
    %cst_13 = arith.constant dense<0.000000e+00> : vector<32x128xf32>
    %25 = tpu.matmul %22, %24, %cst_13 {dimension_numbers = #tpu.dot_dimension_numbers<[1], [0], [0], [1], [0, 0, 1, 1], [], []>} : vector<32x32xbf16>, vector<32x128xbf16>, vector<32x128xf32> -> vector<32x128xf32>
    %26 = arith.addf %19, %25 : vector<32x128xf32>
    %27 = vector.extract_strided_slice %11 {offsets = [0, 2, 0], sizes = [2, 16, 32], strides = [1, 1, 1]} : vector<2x24x32xf32> to vector<2x16x32xf32>
    %28 = vector.shape_cast %27 : vector<2x16x32xf32> to vector<32x32xf32>
    %29 = arith.truncf %28 : vector<32x32xf32> to vector<32x32xbf16>
    %c2 = arith.constant 2 : index
    %c0_14 = arith.constant 0 : index
    %c0_15 = arith.constant 0 : index
    %30 = vector.load %arg4[%c2, %c0_14, %c0_15] : memref<5x32x128xbf16, #tpu.memory_space<vmem>>, vector<1x32x128xbf16>
    %31 = vector.shape_cast %30 : vector<1x32x128xbf16> to vector<32x128xbf16>
    %cst_16 = arith.constant dense<0.000000e+00> : vector<32x128xf32>
    %32 = tpu.matmul %29, %31, %cst_16 {dimension_numbers = #tpu.dot_dimension_numbers<[1], [0], [0], [1], [0, 0, 1, 1], [], []>} : vector<32x32xbf16>, vector<32x128xbf16>, vector<32x128xf32> -> vector<32x128xf32>
    %33 = arith.addf %26, %32 : vector<32x128xf32>
    %34 = vector.extract_strided_slice %11 {offsets = [0, 3, 0], sizes = [2, 16, 32], strides = [1, 1, 1]} : vector<2x24x32xf32> to vector<2x16x32xf32>
    %35 = vector.shape_cast %34 : vector<2x16x32xf32> to vector<32x32xf32>
    %36 = arith.truncf %35 : vector<32x32xf32> to vector<32x32xbf16>
    %c3 = arith.constant 3 : index
    %c0_17 = arith.constant 0 : index
    %c0_18 = arith.constant 0 : index
    %37 = vector.load %arg4[%c3, %c0_17, %c0_18] : memref<5x32x128xbf16, #tpu.memory_space<vmem>>, vector<1x32x128xbf16>
    %38 = vector.shape_cast %37 : vector<1x32x128xbf16> to vector<32x128xbf16>
    %cst_19 = arith.constant dense<0.000000e+00> : vector<32x128xf32>
    %39 = tpu.matmul %36, %38, %cst_19 {dimension_numbers = #tpu.dot_dimension_numbers<[1], [0], [0], [1], [0, 0, 1, 1], [], []>} : vector<32x32xbf16>, vector<32x128xbf16>, vector<32x128xf32> -> vector<32x128xf32>
    %40 = arith.addf %33, %39 : vector<32x128xf32>
    %41 = vector.extract_strided_slice %11 {offsets = [0, 4, 0], sizes = [2, 16, 32], strides = [1, 1, 1]} : vector<2x24x32xf32> to vector<2x16x32xf32>
    %42 = vector.shape_cast %41 : vector<2x16x32xf32> to vector<32x32xf32>
    %43 = arith.truncf %42 : vector<32x32xf32> to vector<32x32xbf16>
    %c4 = arith.constant 4 : index
    %c0_20 = arith.constant 0 : index
    %c0_21 = arith.constant 0 : index
    %44 = vector.load %arg4[%c4, %c0_20, %c0_21] : memref<5x32x128xbf16, #tpu.memory_space<vmem>>, vector<1x32x128xbf16>
    %45 = vector.shape_cast %44 : vector<1x32x128xbf16> to vector<32x128xbf16>
    %cst_22 = arith.constant dense<0.000000e+00> : vector<32x128xf32>
    %46 = tpu.matmul %43, %45, %cst_22 {dimension_numbers = #tpu.dot_dimension_numbers<[1], [0], [0], [1], [0, 0, 1, 1], [], []>} : vector<32x32xbf16>, vector<32x128xbf16>, vector<32x128xf32> -> vector<32x128xf32>
    %47 = arith.addf %40, %46 : vector<32x128xf32>
    %c0_23 = arith.constant 0 : index
    %c0_24 = arith.constant 0 : index
    %48 = vector.load %arg5[%c0_23, %c0_24] : memref<1x128xf32, #tpu.memory_space<vmem>>, vector<1x128xf32>
    %49 = vector.broadcast %48 : vector<1x128xf32> to vector<32x128xf32>
    %50 = arith.addf %47, %49 : vector<32x128xf32>
    %cst_25 = arith.constant 0.000000e+00 : f32
    %51 = vector.broadcast %cst_25 : f32 to vector<32x128xf32>
    %52 = arith.maximumf %50, %51 : vector<32x128xf32>
    %53 = arith.truncf %52 : vector<32x128xf32> to vector<32x128xbf16>
    %c0_26 = arith.constant 0 : index
    %c0_27 = arith.constant 0 : index
    %54 = vector.load %arg6[%c0_26, %c0_27] : memref<128x128xbf16, #tpu.memory_space<vmem>>, vector<128x128xbf16>
    %cst_28 = arith.constant dense<0.000000e+00> : vector<32x128xf32>
    %55 = tpu.matmul %53, %54, %cst_28 {dimension_numbers = #tpu.dot_dimension_numbers<[1], [0], [0], [1], [0, 0, 1, 1], [], []>} : vector<32x128xbf16>, vector<128x128xbf16>, vector<32x128xf32> -> vector<32x128xf32>
    %c0_29 = arith.constant 0 : index
    %c0_30 = arith.constant 0 : index
    %56 = vector.load %arg7[%c0_29, %c0_30] : memref<1x128xf32, #tpu.memory_space<vmem>>, vector<1x128xf32>
    %57 = vector.broadcast %56 : vector<1x128xf32> to vector<32x128xf32>
    %58 = arith.addf %55, %57 : vector<32x128xf32>
    %59 = vector.shape_cast %58 : vector<32x128xf32> to vector<2x16x128xf32>
    %60 = tpu.iota {dimensions = array<i32: 1>} : vector<2x16x128xi32>
    %c0_31 = arith.constant 0 : index
    %61 = memref.load %arg1[%c0_31] : memref<1xi32, #tpu.memory_space<smem>>
    %62 = vector.broadcast %61 : i32 to vector<2x16x128xi32>
    %63 = arith.cmpi slt, %60, %62 : vector<2x16x128xi32>
    %cst_32 = arith.constant 0xFF800000 : f32
    %64 = vector.broadcast %cst_32 : f32 to vector<2x16x128xf32>
    %65 = arith.select %63, %59, %64 : vector<2x16x128xi1>, vector<2x16x128xf32>
    %cst_33 = arith.constant dense<0xFF800000> : vector<2x128xf32>
    %66 = vector.multi_reduction <maximumf>, %65, %cst_33 [1] : vector<2x16x128xf32> to vector<2x128xf32>
    %c0_34 = arith.constant 0 : index
    %c0_35 = arith.constant 0 : index
    %67 = vector.load %arg8[%c0_34, %c0_35] : memref<2x128xf32, #tpu.memory_space<vmem>>, vector<2x128xf32>
    tpu.vector_store %arg8[%c0_34, %c0_35], %66 {strides = array<i32>} : memref<2x128xf32, #tpu.memory_space<vmem>>, vector<2x128xf32>,
    return
  }
  func.func @transform_0(%arg0: i32, %arg1: memref<1xi32, #tpu.memory_space<smem>>) -> (i32, i32, i32) {
    %c0_i32 = arith.constant 0 : i32
    %c0_i32_0 = arith.constant 0 : i32
    %c0_i32_1 = arith.constant 0 : i32
    return %arg0, %c0_i32, %c0_i32_0 : i32, i32, i32
  }
  func.func @transform_1(%arg0: i32, %arg1: memref<1xi32, #tpu.memory_space<smem>>) -> (i32, i32) {
    %c0_i32 = arith.constant 0 : i32
    %c0_i32_0 = arith.constant 0 : i32
    %c0_i32_1 = arith.constant 0 : i32
    return %c0_i32, %c0_i32_0 : i32, i32
  }
  func.func @transform_2(%arg0: i32, %arg1: memref<1xi32, #tpu.memory_space<smem>>) -> (i32, i32, i32) {
    %c0_i32 = arith.constant 0 : i32
    %c0_i32_0 = arith.constant 0 : i32
    %c0_i32_1 = arith.constant 0 : i32
    %c0_i32_2 = arith.constant 0 : i32
    return %c0_i32, %c0_i32_0, %c0_i32_1 : i32, i32, i32
  }
  func.func @transform_3(%arg0: i32, %arg1: memref<1xi32, #tpu.memory_space<smem>>) -> (i32, i32) {
    %c0_i32 = arith.constant 0 : i32
    %c0_i32_0 = arith.constant 0 : i32
    %c0_i32_1 = arith.constant 0 : i32
    return %c0_i32, %c0_i32_0 : i32, i32
  }
  func.func @transform_4(%arg0: i32, %arg1: memref<1xi32, #tpu.memory_space<smem>>) -> (i32, i32) {
    %c0_i32 = arith.constant 0 : i32
    %c0_i32_0 = arith.constant 0 : i32
    %c0_i32_1 = arith.constant 0 : i32
    return %c0_i32, %c0_i32_0 : i32, i32
  }
  func.func @transform_5(%arg0: i32, %arg1: memref<1xi32, #tpu.memory_space<smem>>) -> (i32, i32) {
    %c0_i32 = arith.constant 0 : i32
    %c0_i32_0 = arith.constant 0 : i32
    %c0_i32_1 = arith.constant 0 : i32
    return %c0_i32, %c0_i32_0 : i32, i32
  }
  func.func @transform_6(%arg0: i32, %arg1: memref<1xi32, #tpu.memory_space<smem>>) -> (i32, i32) {
    %c0_i32 = arith.constant 0 : i32
    %c0_i32_0 = arith.constant 0 : i32
    return %arg0, %c0_i32 : i32, i32
  }
}

</mosaic_0001>

<bundles_post_ra>
// kernel: tpu_custom_call.1
= control target key start
LH: loop header
LB: loop body
LE: loop exit
PB: predicated region body
PF: predicated region fallthrough
CT: control target
= control target key end

     0   :  { %v1098_v2 = vmov 0   ;;  %v1099_v6 = vmov 0.0   ;;  %vm1100_vm0 = vmmov 0   ;;  %s1318_s0 = inlined_call_operand.<no memory space> [shape: s32[1], index: 0, kind: input, shape index: {}]   ;;  %s1319_s1 = inlined_call_operand.vmem [shape: s32[2,24,1], index: 1, kind: input, shape index: {}]   ;;  %s1320_s2 = inlined_call_operand.vmem [shape: bf16[128,32], index: 2, kind: input, shape index: {}]   ;;  %s1321_s3 = inlined_call_operand.vmem [shape: bf16[5,32,128], index: 3, kind: input, shape index: {}]   ;;  %s1322_s4 = inlined_call_operand.vmem [shape: f32[1,128], index: 4, kind: input, shape index: {}]   ;;  %s1323_s5 = inlined_call_operand.vmem [shape: bf16[128,128], index: 5, kind: input, shape index: {}]   ;;  %s1324_s6 = inlined_call_operand.vmem [shape: f32[1,128], index: 6, kind: input, shape index: {}]   ;;  %s1325_s7 = inlined_call_operand.hbm [shape: f32[2,128], index: 7, kind: output, shape index: {}]  }
   0x1   :  { %v29_v0 = vld [vmem:[%s1319_s1 + $0x10] sm:$0xff]  ;;  %v27_v1 = vld [vmem:[%s1319_s1] sm:$0xff]  ;;  %1047 = vset.pattern.permute.xlu1 %v1098_v2  ;;  %1046 = vset.pattern.permute.xlu0 %v1098_v2  ;;  %v30_v3 = vld [vmem:[%s1319_s1 + $0x18] sm:$0xff] }
   0x2   :  { %42 = vperm.xlu1 %1047, %v29_v0   ;;  %36 = vperm.xlu0 %1046, %v27_v1   ;;  %v1048_v4 = vld [vmem:[%s1320_s2] sm:$0xff]   ;;  %v28_v5 = vld [vmem:[%s1319_s1 + $0x8] sm:$0xff]  ;;  %v1050_v10 = vld [vmem:[%s1320_s2 + $0x10] sm:$0xff]  }
   0x3   :  { %937 = vmatprep.subr.bf16.mxu0 %v1099_v6  ;;  %v1049_v7 = vld [vmem:[%s1320_s2 + $0x8] sm:$0xff]   ;;  %v31_v9 = vld [vmem:[%s1319_s1 + $0x20] sm:$0xff]  ;;  %953 = vmatprep.mubr.msk.bf16.mxu0 %vm1100_vm0, %v1099_v6  ;;  %v1051_v11 = vld [vmem:[%s1320_s2 + $0x18] sm:$0xff]  }
   0x4   :  { %938 = vmatpush3.bf16.msra.mxu0 %v1048_v4  ;;  %v32_v8 = vld [vmem:[%s1319_s1 + $0x28] sm:$0xff]  ;;  %v1052_v12 = vld [vmem:[%s1320_s2 + $0x20] sm:$0xff]  }
   0x5   :  { %939 = vmatprep.subr.bf16.mxu0 %v1099_v6  ;;  %v1053_v13 = vld [vmem:[%s1320_s2 + $0x28] sm:$0xff]  }
   0x6   :  { %45 = vperm.xlu1 %1047, %v30_v3   ;;  %39 = vperm.xlu0 %1046, %v28_v5  }
   0x8   :  { %940 = vmatpush3.bf16.msra.mxu0 %v1049_v7 }
   0x9   :  { %941 = vmatprep.subr.bf16.mxu0 %v1099_v6 }
   0xa   :  { %51 = vperm.xlu1 %1047, %v32_v8   ;;  %48 = vperm.xlu0 %1046, %v31_v9  }
   0xc   :  { %942 = vmatpush3.bf16.msra.mxu0 %v1050_v10 }
   0xd   :  { %943 = vmatprep.subr.bf16.mxu0 %v1099_v6 }
  0x10   :  { %944 = vmatpush3.bf16.msra.mxu0 %v1051_v11 }
  0x11   :  { %945 = vmatprep.subr.bf16.mxu0 %v1099_v6 }
  0x14   :  { %946 = vmatpush3.bf16.msra.mxu0 %v1052_v12 }
  0x15   :  { %947 = vmatprep.subr.bf16.mxu0 %v1099_v6 }
  0x16   :  { %13 = vsyncpa [#allocation5], 0  ;;  %v1054_v14 = vld [vmem:[%s1320_s2 + $0x30] sm:$0xff]   ;;  %v1055_v15 = vld [vmem:[%s1320_s2 + $0x38] sm:$0xff]   ;;  %v33_v16 = vlaneseq  ;;  %v1101_v22 = vmov 1.0|1.0  }
  0x17   :  { %v1056_v33 = vld [vmem:[%s1321_s3 + $0x10] sm:$0xff]   ;;  %v1057_v34 = vld [vmem:[%s1321_s3 + $0x18] sm:$0xff]   ;;  %v1198_v35 = vld [vmem:[%s1321_s3] sm:$0xff]   ;;  %vm218_vm9 = vcmask 1046528   ;;  %vm375_vm10 = vcmask 1045504   ;;  %vm468_vm11 = vcmask 1044480  }
  0x18   :  { %948 = vmatpush3.bf16.msra.mxu0 %v1053_v13  ;;  %v34_v19 = vand.u32 127, %v33_v16  ;;  %965 = vmatprep.subr.bf16.mxu1 %v1056_v33  ;;  %v1066_v36 = vld [vmem:[%s1323_s5] sm:$0xff]   ;;  %v1067_v37 = vld [vmem:[%s1323_s5 + $0x8] sm:$0xff]   ;;  %v1068_v38 = vld [vmem:[%s1323_s5 + $0x10] sm:$0xff]   ;;  %vm561_vm12 = vcmask 1043456   ;;  %vm252_vm13 = vcmask 261120  }
  0x19   :  { %949 = vmatprep.subr.bf16.mxu0 %v1099_v6  ;;  %966 = vmatpush3.bf16.msra.mxu1 %v1056_v33  ;;  %v1069_v39 = vld [vmem:[%s1323_s5 + $0x18] sm:$0xff]   ;;  %v1070_v40 = vld [vmem:[%s1323_s5 + $0x20] sm:$0xff]   ;;  %v1071_v41 = vld [vmem:[%s1323_s5 + $0x28] sm:$0xff]  }
  0x1a   :  { %967 = vmatprep.subr.bf16.mxu1 %v1057_v34 }
  0x1c   :  { %950 = vmatpush3.bf16.msra.mxu0 %v1054_v14 }
  0x1d   :  { %951 = vmatprep.subr.bf16.mxu0 %v1099_v6  ;;  %968 = vmatpush3.bf16.msra.mxu1 %v1057_v34 }
  0x1e   :  { %973 = vmatprep.subr.bf16.mxu1 %v1198_v35 }
  0x20   :  { %952 = vmatpush3.bf16.msra.mxu0 %v1055_v15 }
  0x21   :  { %1005 = vmatprep.subr.bf16.mxu0 %v1066_v36 }
  0x81   :  { %v43_v17 = vpop.permute.xlu1 %42  ;;  %v37_v18 = vpop.permute.xlu0 %36 }
  0x82   :  { %vm53_vm2 = vcmp.eq.s32.totalorder %v34_v19, %v37_v18  ;;  %vm55_vm7 = vcmp.eq.s32.totalorder %v34_v19, %v43_v17 }
  0x85   :  { %v46_v20 = vpop.permute.xlu1 %45  ;;  %v40_v21 = vpop.permute.xlu0 %39 }
  0x86   :  { %vm54_vm1 = vcmp.eq.s32.totalorder %v34_v19, %v40_v21  ;;  %vm56_vm6 = vcmp.eq.s32.totalorder %v34_v19, %v46_v20 }
  0x87   :  { %vm845_vm3 = vmpackc.low %vm54_vm1, %vm53_vm2  ;;  %v62_v27 = vsel %vm56_vm6, 1.0, %v1099_v6 }
  0x88   :  { %954 = vmatmul.mubr.msk.bf16.vlgmr.msra.gmra.mrb[0].mxu0 %vm845_vm3, %v1101_v22  ;;  %vm894_vm8 = vmpackc.low %vm56_vm6, %vm55_vm7 }
  0x89   :  { %v52_v23 = vpop.permute.xlu1 %51  ;;  %v49_v24 = vpop.permute.xlu0 %48  ;;  %957 = vmatprep.mubr.msk.bf16.mxu0 %vm1100_vm0, %v1099_v6  ;;  %1006 = vmatpush3.bf16.msra.mxu0 %v1066_v36 }
  0x8a   :  { %vm58_vm4 = vcmp.eq.s32.totalorder %v34_v19, %v52_v23  ;;  %vm57_vm5 = vcmp.eq.s32.totalorder %v34_v19, %v49_v24  ;;  %1007 = vmatprep.subr.bf16.mxu0 %v1067_v37 }
  0x8b   :  { %v64_v25 = vsel %vm58_vm4, 1.0, %v1099_v6  ;;  %v63_v26 = vsel %vm57_vm5, 1.0, %v1099_v6 }
  0x8c   :  { %v68_v28 = vpack.c.bf16 %v64_v25, %v64_v25  ;;  %v67_v29 = vpack.c.bf16 %v63_v26, %v62_v27 }
  0x8d   :  { %1008 = vmatpush3.bf16.msra.mxu0 %v1067_v37 }
  0x8e   :  { %v78_v30 = vunpack.c.l.b16 %v68_v28  ;;  %v77_v31 = vunpack.c.h.b16 %v67_v29  ;;  %1009 = vmatprep.subr.bf16.mxu0 %v1068_v38 }
  0x90   :  { %958 = vmatmul.mubr.msk.bf16.gmra.mrb[4].mxu0 %vm894_vm8, %v1101_v22  ;;  %v97_v32 = vpack.c.b16 %v78_v30, %v77_v31 }
  0x91   :  { %961 = vmatprep.mubr.msk.bf16.mxu0 %vm1100_vm0, %v1099_v6  ;;  %1010 = vmatpush3.bf16.msra.mxu0 %v1068_v38  ;;  %vm818_vm0 = vcmask 1041409  }
  0x92   :  { %1011 = vmatprep.subr.bf16.mxu0 %v1069_v39 }
  0x95   :  { %1012 = vmatpush3.bf16.msra.mxu0 %v1069_v39 }
  0x96   :  { %1013 = vmatprep.subr.bf16.mxu0 %v1070_v40 }
  0x98   :  { %962 = vmatmul.mubr.bf16.gmra.mrb[8].mxu0 %v97_v32 }
  0x99   :  { %1014 = vmatpush3.bf16.msra.mxu0 %v1070_v40  ;;  %v1059_v40 = vld [vmem:[%s1321_s3 + $0x8] sm:$0xff]  }
  0x9a   :  { %1015 = vmatprep.subr.bf16.mxu0 %v1071_v41 }
  0x9d   :  { %1016 = vmatpush3.bf16.msra.mxu0 %v1071_v41 }
 0x15b   :  { %v1219_v42 = vpop.f32.mrb[0].mxu0 }
 0x15c   :  { %v955_v43 = vpop.f32.mrb[1].mxu0  ;;  %v376_v44 = vrot.slane %v1219_v42, 2  ;;  %v469_v45 = vrot.slane %v1219_v42, 3  ;;  %v562_v46 = vrot.slane %v1219_v42, 4  ;;  %v219_v48 = vrot.slane %v1219_v42, 1 }
 0x15d   :  { %v1224_v47 = vpop.f32.mrb[2].mxu0  ;;  %v1060_v43 = vld [vmem:[%s1321_s3 + $0x20] sm:$0xff]  }
 0x15e   :  { %v377_v49 = vrot.slane %v1224_v47, 2  ;;  %v470_v50 = vrot.slane %v1224_v47, 3  ;;  %v563_v51 = vrot.slane %v1224_v47, 4  ;;  %v956_v52 = vpop.f32.mrb[3].mxu0  ;;  %v220_v53 = vrot.slane %v1224_v47, 1 }
 0x15f   :  { %v206_v54 = vpack.c.bf16 %v1224_v47, %v1219_v42  ;;  %v1065_v47 = vld [vmem:[%s1321_s3 + $0x48] sm:$0xff]  }
 0x160   :  { %v221_v55 = vsel %vm218_vm9, %v219_v48, %v220_v53  ;;  %v378_v56 = vsel %vm375_vm10, %v376_v44, %v377_v49  ;;  %v1236_v57 = vsel %vm468_vm11, %v469_v45, %v470_v50  ;;  %v1239_v58 = vsel %vm561_vm12, %v562_v46, %v563_v51  ;;  %v1061_v44 = vld [vmem:[%s1321_s3 + $0x28] sm:$0xff]   ;;  %v1063_v45 = vld [vmem:[%s1321_s3 + $0x38] sm:$0xff]   ;;  %v1064_v46 = vld [vmem:[%s1321_s3 + $0x40] sm:$0xff]  }
 0x161   :  { %v1072_v48 = vld [vmem:[%s1323_s5 + $0x30] sm:$0xff]  }
 0x162   :  { %1017 = vmatprep.subr.bf16.mxu0 %v1072_v48 }
 0x163   :  { %v191_v59 = vpop.f32.mrb[4].mxu0  ;;  %1018 = vmatpush3.bf16.msra.mxu0 %v1072_v48 }
 0x164   :  { %v222_v60 = vrot.slane %v191_v59, 1  ;;  %v379_v61 = vrot.slane %v191_v59, 2  ;;  %v472_v62 = vrot.slane %v191_v59, 3  ;;  %v565_v63 = vrot.slane %v191_v59, 4  ;;  %v959_v0 = vpop.f32.mrb[5].mxu0 }
 0x165   :  { %v194_v1 = vpop.f32.mrb[6].mxu0 }
 0x166   :  { %v960_v2 = vpop.f32.mrb[7].mxu0  ;;  %v223_v3 = vsel %vm218_vm9, %v220_v53, %v222_v60  ;;  %v380_v4 = vsel %vm375_vm10, %v377_v49, %v379_v61  ;;  %v473_v5 = vsel %vm468_vm11, %v470_v50, %v472_v62  ;;  %v1245_v6 = vsel %vm561_vm12, %v563_v51, %v565_v63  ;;  %v1073_v49 = vld [vmem:[%s1323_s5 + $0x38] sm:$0xff]   ;;  %v883_v50 = vld [vmem:[%s1322_s4] ss:$0 sm:$0xff] }
 0x167   :  { %v233_v7 = vpack.c.bf16 %v223_v3, %v221_v55  ;;  %v390_v8 = vpack.c.bf16 %v380_v4, %v378_v56  ;;  %v483_v9 = vpack.c.bf16 %v473_v5, %v1236_v57  ;;  %v576_v10 = vpack.c.bf16 %v1245_v6, %v1239_v58  ;;  %1019 = vmatprep.subr.bf16.mxu0 %v1073_v49  ;;  %v884_v2 = vld [vmem:[%s1324_s6] ss:$0 sm:$0xff] }
 0x168   :  { %v381_v11 = vrot.slane %v194_v1, 2  ;;  %v474_v12 = vrot.slane %v194_v1, 3  ;;  %v224_v20 = vrot.slane %v194_v1, 1  ;;  %v567_v21 = vrot.slane %v194_v1, 4  ;;  %1020 = vmatpush3.bf16.msra.mxu0 %v1073_v49 }
 0x169   :  { %969 = vmatprep.mubr.msk.bf16.mxu1 %vm252_vm13, %v233_v7  ;;  %v795_v4 = vstv %s1318_s0  ;;  %s1102_s0 = smov [#allocation4]  }
 0x16a   :  { %s828_s6 = sshll.u32 %s1102_s0, 4  ;;  %s829_s6 = int_to_ptr.vmem [resolvable:$true] %s828_s6 }
 0x16b   :  { %v199_v13 = vpop.f32.mrb[8].mxu0  ;;  %s1074_s18 = scalar_lea.vmem %s829_s6, 32  ;;  %p1079_p1 = scmp.lt.s32.totalorder %s829_s6, %s829_s6 }
 0x16c   :  { %v207_v14 = vpack.c.bf16 %v199_v13, %v194_v1  ;;  %v225_v15 = vrot.slane %v199_v13, 1  ;;  %v382_v17 = vrot.slane %v199_v13, 2  ;;  %v475_v18 = vrot.slane %v199_v13, 3  ;;  %v963_v19 = vpop.f32.mrb[9].mxu0  ;;  %p1075_p0 = scmp.ne.s32.totalorder %s829_s6, %s1074_s18  ;;  %p1080_p2 = scmp.lt.s32.totalorder %s1074_s18, %s1074_s18 }
 0x16d   :  { %v568_v22 = vrot.slane %v199_v13, 4  ;;  %v202_v23 = vpop.f32.mrb[10].mxu0  ;;  %v792_v1 = vshrl.u32 %v33_v16, 7 }
 0x16e   :  { %v227_v24 = vrot.slane %v202_v23, 1  ;;  %v383_v25 = vsel %vm375_vm10, %v381_v11, %v382_v17  ;;  %v384_v26 = vrot.slane %v202_v23, 2  ;;  %v476_v27 = vsel %vm468_vm11, %v474_v12, %v475_v18  ;;  %v964_v28 = vpop.f32.mrb[11].mxu0  ;;  %p1081_p3 = por %p1080_p2, %p1079_p1 }
 0x16f   :  { %v477_v29 = vrot.slane %v202_v23, 3  ;;  %v569_v30 = vsel %vm561_vm12, %v567_v21, %v568_v22  ;;  %v570_v31 = vrot.slane %v202_v23, 4  ;;  %v226_v32 = vsel %vm218_vm9, %v224_v20, %v225_v15 }
 0x170   :  { %v385_v33 = vsel %vm375_vm10, %v382_v17, %v384_v26  ;;  %v228_v34 = vsel %vm218_vm9, %v225_v15, %v227_v24  ;;  %v793_v3 = vadd.s32 8, %v792_v1  ;;  %vm796_vm14 = vcmp.lt.s32.totalorder %v792_v1, %v795_v4  ;;  %p1082_p4 = pnand %p1081_p3, %p1075_p0 }
 0x171   :  { %v391_v36 = vpack.c.bf16 %v385_v33, %v383_v25  ;;  %v478_v37 = vsel %vm468_vm11, %v475_v18, %v477_v29  ;;  %v571_v38 = vsel %vm561_vm12, %v568_v22, %v570_v31  ;;  %v234_v39 = vpack.c.bf16 %v228_v34, %v226_v32 }
 0x172   :  { %v484_v41 = vpack.c.bf16 %v478_v37, %v476_v27  ;;  %v577_v42 = vpack.c.bf16 %v571_v38, %v569_v30  ;;  %vm797_vm15 = vcmp.lt.s32.totalorder %v793_v3, %v795_v4 }
 0x173   :  { %970 = vmatmul.mubr.msk.bf16.vlgmr.msra.gmra.mrb[0].mxu1 %vm252_vm13, %v234_v39 }
 0x174   :  { %974 = vmatpush3.bf16.msra.mxu1 %v1198_v35  ;;  %977 = vmatprep.mubr.msk.bf16.mxu1 %vm252_vm13, %v206_v54  ;;  %v1062_v35 = vld [vmem:[%s1321_s3 + $0x30] sm:$0xff]  }
 0x175   :  { %975 = vmatprep.subr.bf16.mxu1 %v1059_v40 }
 0x178   :  { %976 = vmatpush3.bf16.msra.mxu1 %v1059_v40 }
 0x179   :  { %981 = vmatprep.subr.bf16.mxu1 %v1060_v43 }
 0x17f   :  { %978 = vmatmul.mubr.msk.bf16.vlgmr.msra.gmra.mrb[0].mxu1 %vm252_vm13, %v207_v14 }
 0x180   :  { %982 = vmatpush3.bf16.msra.mxu1 %v1060_v43  ;;  %985 = vmatprep.mubr.msk.bf16.mxu1 %vm252_vm13, %v390_v8 }
 0x181   :  { %983 = vmatprep.subr.bf16.mxu1 %v1061_v44 }
 0x184   :  { %984 = vmatpush3.bf16.msra.mxu1 %v1061_v44 }
 0x185   :  { %989 = vmatprep.subr.bf16.mxu1 %v1062_v35 }
 0x18b   :  { %986 = vmatmul.mubr.msk.bf16.vlgmr.msra.gmra.mrb[0].mxu1 %vm252_vm13, %v391_v36 }
 0x18c   :  { %990 = vmatpush3.bf16.msra.mxu1 %v1062_v35  ;;  %993 = vmatprep.mubr.msk.bf16.mxu1 %vm252_vm13, %v483_v9 }
 0x18d   :  { %991 = vmatprep.subr.bf16.mxu1 %v1063_v45 }
 0x190   :  { %992 = vmatpush3.bf16.msra.mxu1 %v1063_v45 }
 0x191   :  { %997 = vmatprep.subr.bf16.mxu1 %v1064_v46 }
 0x197   :  { %994 = vmatmul.mubr.msk.bf16.vlgmr.msra.gmra.mrb[0].mxu1 %vm252_vm13, %v484_v41 }
 0x198   :  { %998 = vmatpush3.bf16.msra.mxu1 %v1064_v46  ;;  %1001 = vmatprep.mubr.msk.bf16.mxu1 %vm252_vm13, %v576_v10 }
 0x199   :  { %999 = vmatprep.subr.bf16.mxu1 %v1065_v47 }
 0x19c   :  { %1000 = vmatpush3.bf16.msra.mxu1 %v1065_v47 }
 0x1a3   :  { %1002 = vmatmul.mubr.msk.bf16.vlgmr.msra.gmra.mrb[0].mxu1 %vm252_vm13, %v577_v42 }
 0x276   :  { %v1003_v51 = vpop.f32.mrb[0].mxu1 }
 0x277   :  { %v663_v52 = vadd.f32 %v1003_v51, %v883_v50  ;;  %v635_v53 = vpop.f32.mrb[1].mxu1 }
 0x278   :  { %v661_v54 = vadd.f32 %v883_v50, %v635_v53  ;;  %v1004_v55 = vpop.f32.mrb[2].mxu1 }
 0x279   :  { %v664_v56 = vadd.f32 %v1004_v55, %v883_v50  ;;  %v638_v57 = vpop.f32.mrb[3].mxu1  ;;  %v667_v59 = vmax.f32 %v663_v52, 0.0 }
 0x27a   :  { %v662_v58 = vadd.f32 %v883_v50, %v638_v57  ;;  %v665_v61 = vmax.f32 %v661_v54, 0.0 }
 0x27b   :  { %v668_v60 = vmax.f32 %v664_v56, 0.0 }
 0x27c   :  { %v666_v62 = vmax.f32 %v662_v58, 0.0 }
 0x27d   :  { %v670_v63 = vpack.c.bf16 %v668_v60, %v667_v59 }
 0x27e   :  { %v669_v0 = vpack.c.bf16 %v666_v62, %v665_v61 }
 0x280   :  { %1021 = vmatprep.mubr.bf16.mxu0 %v669_v0 }
 0x281   :  { %1022 = vmatmul.mubr.bf16.vlgmr.msra.gmra.mrb[12].mxu0 %v670_v63 }
 0x354   :  { %v1023_v5 = vpop.f32.mrb[12].mxu0 }
 0x355   :  { %v785_v6 = vadd.f32 %v1023_v5, %v884_v2  ;;  %v776_v7 = vpop.f32.mrb[13].mxu0 }
 0x356   :  { %v777_v8 = vadd.f32 %v884_v2, %v776_v7  ;;  %v1024_v9 = vpop.f32.mrb[14].mxu0 }
 0x357   :  { %v788_v10 = vadd.f32 %v1024_v9, %v884_v2  ;;  %v779_v11 = vpop.f32.mrb[15].mxu0  ;;  %v800_v16 = vsel %vm796_vm14, %v785_v6, -inf }
 0x358   :  { %v780_v12 = vadd.f32 %v884_v2, %v779_v11  ;;  %v798_v14 = vsel %vm796_vm14, %v777_v8, -inf }
 0x359   :  { %v801_v13 = vsel %vm797_vm15, %v788_v10, -inf }
 0x35a   :  { %v809_v15 = vmax.f32 %v800_v16, %v801_v13  ;;  %v799_v17 = vsel %vm797_vm15, %v780_v12, -inf }
 0x35b   :  { %v802_v18 = vmax.f32 %v798_v14, %v799_v17 }
 0x35c   :  { %v810_v19 = vrot.slane %v809_v15, 4 }
 0x35d   :  { %v803_v20 = vrot.slane %v802_v18, 4 }
 0x35e   :  { %v811_v21 = vmax.f32 %v809_v15, %v810_v19 }
 0x35f   :  { %v804_v22 = vmax.f32 %v802_v18, %v803_v20 }
 0x360   :  { %v812_v23 = vrot.slane %v811_v21, 2 }
 0x361   :  { %v805_v24 = vrot.slane %v804_v22, 2 }
 0x362   :  { %v813_v25 = vmax.f32 %v811_v21, %v812_v23 }
 0x363   :  { %v806_v26 = vmax.f32 %v804_v22, %v805_v24 }
 0x364   :  { %v814_v27 = vrot.slane %v813_v25, 1 }
 0x365   :  { %v807_v28 = vrot.slane %v806_v26, 1 }
 0x366   :  { %v815_v29 = vmax.f32 %v813_v25, %v814_v27 }
 0x367   :  { %v808_v30 = vmax.f32 %v806_v26, %v807_v28 }
 0x369   :  { %v819_v31 = vsel %vm818_vm0, %v815_v29, %v808_v30 }
 0x36a   :  { %821 = vst [vmem:[#allocation4] sm:$0x3] %v819_v31 }
 0x36b   :  { %1085 = shalt.err (!%p1082_p4)
}
 0x36c   :  { %s1086_s21 = scalar_lea.hbm %s1325_s7, 32 }
 0x36d   :  { %p1087_p5 = scmp.ne.s32.totalorder %s1325_s7, %s1086_s21  ;;  %p1090_p6 = scmp.lt.u32.totalorder %s1086_s21, %s1325_s7 }
 0x36f   :  { %p1092_p7 = pnand %p1090_p6, %p1087_p5 }
 0x371   :  { %1095 = shalt.err (!%p1092_p7)
}
 0x372   :  { %831 = dma.vmem_to_hbm [thread:$0]  %s829_s6, 32, %s1325_s7, [#allocation5]  }
 0x373   :  { %1096 = dma.done.wait [#allocation5], 32  }
 0x374   :  { %1097 = vsyncadd [#allocation5], 4294967264 }
 0x375   :  { %835 = vsyncpa [#allocation5], 1 }

</bundles_post_ra>
